<compile_context>
chip_gen: v5e
topology: v5e:2x2
jax: 0.10.0
libtpu: 0.0.40
codegen_flags: <defaults>
</compile_context>

<pallas_src>
import jax
import jax.numpy as jnp
from jax.experimental import pallas as pl
from jax.experimental.pallas import tpu as pltpu


LANES = 1024            # lane-dense last dim: 8 vregs wide, multiple of 128
MAX_BLOCK_ROWS = 512    # 512 x 1024 x 4 B = 2 MiB per block -> ~8 MiB with
                        # double-buffered in+out; safe on v5e/v6e/v7x VMEM
SMALL_N_THRESHOLD = 1024  # below this, plain fused XLA beats kernel launch


def _linear_kernel(w_ref, b_ref, x_ref, o_ref):
    # w_ref / b_ref are (1, 1) SMEM scalars; x_ref / o_ref are lane-dense
    # (block_rows, LANES) VMEM tiles.  Single VPU fused multiply-add.
    o_ref[...] = x_ref[...] * w_ref[0, 0] + b_ref[0, 0]


def linear_forward(x, weight, bias):
    """x: (N, 1) f32, weight: (1, 1) f32, bias: (1,) f32 -> (N, 1) f32."""
    n, f_in = x.shape
    assert f_in == 1 and weight.shape == (1, 1) and bias.shape == (1,)
    w = weight.astype(jnp.float32)
    b = bias.astype(jnp.float32)

    if n < SMALL_N_THRESHOLD:
        # Pallas launch + DMA setup dwarfs a few FMAs; let XLA fuse it.
        return (x.astype(jnp.float32) * w[0, 0] + b[0]).reshape(n, 1)

    # --- lane-dense reshape + pad to tile boundary (wrapper-side) -----------
    flat = x.reshape(-1).astype(jnp.float32)
    rows = pl.cdiv(n, LANES)
    if rows >= MAX_BLOCK_ROWS:
        block_rows = MAX_BLOCK_ROWS
    else:
        block_rows = ((rows + 7) // 8) * 8      # keep sublane multiple of 8
    rows_padded = ((rows + block_rows - 1) // block_rows) * block_rows
    total = rows_padded * LANES
    if total != n:
        flat = jnp.pad(flat, (0, total - n))    # padded lanes sliced off below
    x2d = flat.reshape(rows_padded, LANES)

    grid = (rows_padded // block_rows,)

    out2d = pl.pallas_call(
        _linear_kernel,
        out_shape=jax.ShapeDtypeStruct((rows_padded, LANES), jnp.float32),
        grid=grid,
        in_specs=[
            pl.BlockSpec((1, 1), lambda i: (0, 0),
                         memory_space=pltpu.MemorySpace.SMEM),
            pl.BlockSpec((1, 1), lambda i: (0, 0),
                         memory_space=pltpu.MemorySpace.SMEM),
            pl.BlockSpec((block_rows, LANES), lambda i: (i, 0)),
        ],
        out_specs=pl.BlockSpec((block_rows, LANES), lambda i: (i, 0)),
        # Independent row tiles: shard grid steps across both TCs on v7x
        # (harmless no-op on single-TC v5e/v6e).
        compiler_params=pltpu.CompilerParams(
            dimension_semantics=("parallel",)),
    )(w.reshape(1, 1), b.reshape(1, 1), x2d)

    # Drop padded elements; never expose them to the user-visible output.
    return out2d.reshape(-1)[:n].reshape(n, 1)


if __name__ == "__main__":
    key = jax.random.PRNGKey(0)
    k_x, k_w, k_b = jax.random.split(key, 3)

    # Deterministic parameter init, matching nn.Linear(1, 1) shapes
    # (PyTorch uses U(-1, 1) bounds here since fan_in = 1).
    weight = jax.random.uniform(k_w, (1, 1), jnp.float32, -1.0, 1.0)
    bias = jax.random.uniform(k_b, (1,), jnp.float32, -1.0, 1.0)

    # Batch large enough to exercise the lane-dense Pallas path.
    n = 4096
    x = jax.random.normal(k_x, (n, 1), jnp.float32)
    y = linear_forward(x, weight, bias)
    jax.block_until_ready(y)
    y_ref = x @ weight.T + bias
    assert y.shape == (n, 1)
    assert jnp.allclose(y, y_ref, atol=1e-6), (y[:4], y_ref[:4])

    # Tiny-batch path (plain-JAX fallback; Pallas launch overhead not worth it).
    xs = jax.random.normal(k_x, (8, 1), jnp.float32)
    ys = linear_forward(xs, weight, bias)
    jax.block_until_ready(ys)
    assert jnp.allclose(ys, xs @ weight.T + bias, atol=1e-6)

    print("KERNEL_OK")
</pallas_src>

<mosaic_0001>
module attributes {stable_mosaic.version = 11 : i64} {
  func.func @_linear_kernel(%arg0: i32, %arg1: memref<1x1xf32, #tpu.memory_space<smem>>, %arg2: memref<1x1xf32, #tpu.memory_space<smem>>, %arg3: memref<8x1024xf32, #tpu.memory_space<vmem>>, %arg4: memref<8x1024xf32, #tpu.memory_space<vmem>>) attributes {dimension_semantics = [#tpu.dimension_semantics<parallel>], iteration_bounds = array<i64: 1>, scalar_prefetch = 0 : i64, scratch_operands = 0 : i64, tpu.core_type = #tpu.core_type<tc>, window_params = [{transform_indices = @transform_0, window_bounds = array<i64: 1, 1>}, {transform_indices = @transform_1, window_bounds = array<i64: 1, 1>}, {transform_indices = @transform_2, window_bounds = array<i64: 8, 1024>}, {transform_indices = @transform_3, window_bounds = array<i64: 8, 1024>}]} {
    %c0 = arith.constant 0 : index
    %c0_0 = arith.constant 0 : index
    %0 = vector.load %arg3[%c0, %c0_0] : memref<8x1024xf32, #tpu.memory_space<vmem>>, vector<8x1024xf32>
    %c0_1 = arith.constant 0 : index
    %c0_2 = arith.constant 0 : index
    %1 = memref.load %arg1[%c0_1, %c0_2] : memref<1x1xf32, #tpu.memory_space<smem>>
    %2 = vector.broadcast %1 : f32 to vector<8x1024xf32>
    %3 = arith.mulf %0, %2 : vector<8x1024xf32>
    %c0_3 = arith.constant 0 : index
    %c0_4 = arith.constant 0 : index
    %4 = memref.load %arg2[%c0_3, %c0_4] : memref<1x1xf32, #tpu.memory_space<smem>>
    %5 = vector.broadcast %4 : f32 to vector<8x1024xf32>
    %6 = arith.addf %3, %5 : vector<8x1024xf32>
    %c0_5 = arith.constant 0 : index
    %c0_6 = arith.constant 0 : index
    %7 = vector.load %arg4[%c0_5, %c0_6] : memref<8x1024xf32, #tpu.memory_space<vmem>>, vector<8x1024xf32>
    tpu.vector_store %arg4[%c0_5, %c0_6], %6 {strides = array<i32>} : memref<8x1024xf32, #tpu.memory_space<vmem>>, vector<8x1024xf32>,
    return
  }
  func.func @transform_0(%arg0: i32) -> (i32, i32) {
    %c0_i32 = arith.constant 0 : i32
    %c0_i32_0 = arith.constant 0 : i32
    %c0_i32_1 = arith.constant 0 : i32
    return %c0_i32, %c0_i32_0 : i32, i32
  }
  func.func @transform_1(%arg0: i32) -> (i32, i32) {
    %c0_i32 = arith.constant 0 : i32
    %c0_i32_0 = arith.constant 0 : i32
    %c0_i32_1 = arith.constant 0 : i32
    return %c0_i32, %c0_i32_0 : i32, i32
  }
  func.func @transform_2(%arg0: i32) -> (i32, i32) {
    %c0_i32 = arith.constant 0 : i32
    %c0_i32_0 = arith.constant 0 : i32
    return %arg0, %c0_i32 : i32, i32
  }
  func.func @transform_3(%arg0: i32) -> (i32, i32) {
    %c0_i32 = arith.constant 0 : i32
    %c0_i32_0 = arith.constant 0 : i32
    return %arg0, %c0_i32 : i32, i32
  }
}

</mosaic_0001>

<bundles_post_ra>
// kernel: tpu_custom_call.1
= control target key start
LH: loop header
LB: loop body
LE: loop exit
PB: predicated region body
PF: predicated region fallthrough
CT: control target
= control target key end

     0   :  { %10 = vsyncpa [#allocation5], 0  ;;  %s172_s0 = inlined_call_operand.<no memory space> [shape: f32[1,1], index: 0, kind: input, shape index: {}]   ;;  %s173_s1 = inlined_call_operand.<no memory space> [shape: f32[1,1], index: 1, kind: input, shape index: {}]   ;;  %s174_s2 = inlined_call_operand.hbm [shape: f32[8,1024], index: 2, kind: input, shape index: {}]   ;;  %s175_s3 = inlined_call_operand.hbm [shape: f32[8,1024], index: 3, kind: output, shape index: {}]  }
   0x1   :  { %11 = vsyncpa [#allocation6], 0  ;;  %s21_s14 = sshll.u32 %s174_s2, 4  ;;  %s138_s15 = smov [#allocation4]   ;;  %s22_s14 = int_to_ptr.hbm [resolvable:$true] %s21_s14 }
   0x2   :  { %s23_s16 = sshll.u32 %s138_s15, 4  ;;  %s24_s16 = int_to_ptr.vmem [resolvable:$true] %s23_s16 }
   0x3   :  { %26 = dma.hbm_to_vmem [thread:$0]  %s22_s14, 1024, %s24_s16, [#allocation5]  }
   0x4   :  { %134 = dma.done.wait [#allocation5], 1024  }
   0x5   :  { %135 = vsyncadd [#allocation5], 4294966272  ;;  %v40_v0 = vstv %s172_s0  ;;  %v31_v1 = vld [vmem:[#allocation4] sm:$0xff]  ;;  %v50_v2 = vstv %s173_s1  ;;  %v32_v3 = vld [vmem:[#allocation4 + $0x8] sm:$0xff]  ;;  %s139_s0 = smov [#allocation7]   ;;  %s74_s22 = sshll.u32 %s175_s3, 4  ;;  %s75_s22 = int_to_ptr.hbm [resolvable:$true] %s74_s22 }
   0x6   :  { %v33_v4 = vld [vmem:[#allocation4 + $0x10] sm:$0xff]  ;;  %v41_v5 = vmul.f32 %v40_v0, %v31_v1  ;;  %v42_v6 = vmul.f32 %v40_v0, %v32_v3  ;;  %v34_v8 = vld [vmem:[#allocation4 + $0x18] sm:$0xff]  ;;  %v35_v9 = vld [vmem:[#allocation4 + $0x20] sm:$0xff]  ;;  %s72_s1 = sshll.u32 %s139_s0, 4  ;;  %s73_s1 = int_to_ptr.vmem [resolvable:$true] %s72_s1 }
   0x7   :  { %v43_v7 = vmul.f32 %v40_v0, %v33_v4  ;;  %v36_v10 = vld [vmem:[#allocation4 + $0x28] sm:$0xff]  ;;  %v44_v11 = vmul.f32 %v40_v0, %v34_v8  ;;  %v45_v12 = vmul.f32 %v40_v0, %v35_v9  ;;  %v37_v14 = vld [vmem:[#allocation4 + $0x30] sm:$0xff]  ;;  %v38_v15 = vld [vmem:[#allocation4 + $0x38] sm:$0xff] }
   0x8   :  { %v46_v13 = vmul.f32 %v40_v0, %v36_v10  ;;  %v51_v16 = vadd.f32 %v50_v2, %v41_v5  ;;  %v52_v17 = vadd.f32 %v50_v2, %v42_v6  ;;  %v47_v19 = vmul.f32 %v40_v0, %v37_v14 }
   0x9   :  { %v53_v18 = vadd.f32 %v50_v2, %v43_v7  ;;  %v54_v20 = vadd.f32 %v50_v2, %v44_v11  ;;  %v48_v21 = vmul.f32 %v40_v0, %v38_v15  ;;  %v55_v22 = vadd.f32 %v50_v2, %v45_v12 }
   0xa   :  { %59 = vst [vmem:[#allocation7] sm:$0xff] %v51_v16  ;;  %v56_v23 = vadd.f32 %v50_v2, %v46_v13  ;;  %v57_v24 = vadd.f32 %v50_v2, %v47_v19 }
   0xb   :  { %60 = vst [vmem:[#allocation7 + $0x8] sm:$0xff] %v52_v17  ;;  %v58_v25 = vadd.f32 %v50_v2, %v48_v21 }
   0xc   :  { %61 = vst [vmem:[#allocation7 + $0x10] sm:$0xff] %v53_v18 }
   0xd   :  { %62 = vst [vmem:[#allocation7 + $0x18] sm:$0xff] %v54_v20 }
   0xe   :  { %63 = vst [vmem:[#allocation7 + $0x20] sm:$0xff] %v55_v22 }
   0xf   :  { %64 = vst [vmem:[#allocation7 + $0x28] sm:$0xff] %v56_v23 }
  0x10   :  { %65 = vst [vmem:[#allocation7 + $0x30] sm:$0xff] %v57_v24 }
  0x11   :  { %66 = vst [vmem:[#allocation7 + $0x38] sm:$0xff] %v58_v25 }
  0x12   :  { %77 = dma.vmem_to_hbm [thread:$0]  %s73_s1, 1024, %s75_s22, [#allocation6]  }
  0x13   :  { %136 = dma.done.wait [#allocation6], 1024  }
  0x14   :  { %137 = vsyncadd [#allocation6], 4294966272 }
  0x15   :  { %82 = vsyncpa [#allocation5], 1 }
  0x16   :  { %83 = vsyncpa [#allocation6], 1 }

</bundles_post_ra>
